<compile_context>
chip_gen: v7x
topology: tpu7x:2x2x1
jax: 0.10.0
libtpu: 0.0.40
codegen_flags: <defaults>
</compile_context>

<pallas_src>
import functools

import jax
import jax.numpy as jnp
from jax import lax
from jax.experimental import pallas as pl
from jax.experimental.pallas import tpu as pltpu


_VPU_MAX_CIN = 16                         # Cin <= this -> VPU broadcast-FMA path
_DEFAULT_VMEM_BYTES = 64 * 1024 * 1024    # v7x per-core VMEM (smallest in fleet)

_VMEM_CAP_CACHE = None
_MXU_PATH_OK = None


# --------------------------------------------------------------------------
# Per-generation VMEM sizing
# --------------------------------------------------------------------------
def _vmem_capacity():
    global _VMEM_CAP_CACHE
    if _VMEM_CAP_CACHE is None:
        cap = _DEFAULT_VMEM_BYTES
        try:
            info = pltpu.get_tpu_info()
            got = int(getattr(info, "vmem_capacity_bytes", 0) or 0)
            if got > 0:
                cap = got
        except Exception:
            pass
        _VMEM_CAP_CACHE = cap
    return _VMEM_CAP_CACHE


def _vmem_limit_bytes():
    cap = _vmem_capacity()
    return max(32 * 1024 * 1024, min(int(cap * 0.65), 112 * 1024 * 1024))


def _stream_budget_bytes():
    cap = _vmem_capacity()
    return max(8 * 1024 * 1024, int(cap * 0.30))


# --------------------------------------------------------------------------
# Kernels
# --------------------------------------------------------------------------
def _make_vpu_kernel(cin, cout, two_w):
    """Small-Cin path: unrolled VPU broadcast-FMAs, zero in-kernel relayouts."""
    n_chain = max(1, min(4, cin))

    def kernel(x_ref, w_ref, b_ref, o_ref):
        # x_ref: (Cin, th, 2W)  w_ref: (4, Cout, Cin)  b_ref: (Cout, 1)
        # o_ref: (Cout, th, 4W)   [lanes ordered (kh, 2w+kw)]
        even = (lax.broadcasted_iota(jnp.int32, (1, 1, two_w), 2) % 2) == 0
        acc = []
        for k in range(4):                                 # k = kh*2 + kw
            wk = w_ref[k].astype(jnp.float32)              # (Cout, Cin)
            # interleaved chains + pairwise combine -> shorter VALU dep chain
            chains = []
            for c0 in range(n_chain):
                part = None
                for ci in range(c0, cin, n_chain):
                    term = (wk[:, ci:ci + 1][:, :, None]
                            * x_ref[ci].astype(jnp.float32)[None, :, :])
                    part = term if part is None else part + term
                chains.append(part)
            while len(chains) > 1:
                nxt = [chains[i] + chains[i + 1]
                       for i in range(0, len(chains) - 1, 2)]
                if len(chains) % 2:
                    nxt.append(chains[-1])
                chains = nxt
            acc.append(chains[0])                          # (Cout, th, 2W)
        b = b_ref[...].astype(jnp.float32)[:, :, None]     # (Cout, 1, 1)
        y_top = jnp.where(even, acc[0], acc[1]) + b        # kh = 0 plane
        y_bot = jnp.where(even, acc[2], acc[3]) + b        # kh = 1 plane
        o_ref[...] = jnp.concatenate([y_top, y_bot], axis=-1).astype(o_ref.dtype)

    return kernel


def _make_mxu_kernel(cout, th, two_w):
    """Large-Cin path: lane-dense MXU matmuls + parity select."""

    def kernel(x_ref, w_ref, b_ref, o_ref):
        # x_ref: (Cin, th*2W)  w_ref: (4, Cout, Cin)  b_ref: (Cout, 1)
        # o_ref: (Cout, th, 4W)
        x = x_ref[...]
        ys = [jnp.dot(w_ref[k], x,
                      precision=lax.Precision.HIGHEST,
                      preferred_element_type=jnp.float32)
              for k in range(4)]                           # each (Cout, th*2W)
        even = (lax.broadcasted_iota(jnp.int32, (1, th * two_w), 1) % 2) == 0
        b = b_ref[...].astype(jnp.float32)                 # (Cout, 1)
        y_top = (jnp.where(even, ys[0], ys[1]) + b).reshape(cout, th, two_w)
        y_bot = (jnp.where(even, ys[2], ys[3]) + b).reshape(cout, th, two_w)
        o_ref[...] = jnp.concatenate([y_top, y_bot], axis=-1).astype(o_ref.dtype)

    return kernel


# --------------------------------------------------------------------------
# pallas_call wrapper
# --------------------------------------------------------------------------
@functools.partial(jax.jit, static_argnames=("use_mxu", "th"))
def _up_impl(x, weight, bias, *, use_mxu, th):
    N, Cin, H, W = x.shape
    Cout = weight.shape[1]
    W2, W4 = 2 * W, 4 * W

    # kw lane-duplication of the (small) input: X2[..., 2w+kw] = x[..., w].
    x2 = jnp.repeat(x, 2, axis=3)                          # (N, Cin, H, 2W)
    # taps packed k = kh*2 + kw:  w_mat[k, co, ci] = weight[ci, co, kh, kw]
    w_mat = jnp.transpose(weight, (2, 3, 1, 0)).reshape(4, Cout, Cin)
    b_col = bias.reshape(Cout, 1)

    n_h = pl.cdiv(H, th)
    out_sds = jax.ShapeDtypeStruct((N, Cout, H, W4), x.dtype)
    out_spec = pl.BlockSpec((None, Cout, th, W4), lambda n, h: (n, 0, h, 0))
    w_spec = pl.BlockSpec((4, Cout, Cin), lambda n, h: (0, 0, 0))
    b_spec = pl.BlockSpec((Cout, 1), lambda n, h: (0, 0))
    cparams = pltpu.CompilerParams(
        dimension_semantics=("parallel", "parallel"),
        vmem_limit_bytes=_vmem_limit_bytes(),
    )

    if use_mxu:
        x_in = x2.reshape(N, Cin, H * W2)                  # free reshape
        x_spec = pl.BlockSpec((None, Cin, th * W2), lambda n, h: (n, 0, h))
        kernel = _make_mxu_kernel(Cout, th, W2)
    else:
        x_in = x2
        x_spec = pl.BlockSpec((None, Cin, th, W2), lambda n, h: (n, 0, h, 0))
        kernel = _make_vpu_kernel(Cin, Cout, W2)

    y = pl.pallas_call(
        kernel,
        out_shape=out_sds,
        grid_spec=pltpu.PrefetchScalarGridSpec(
            num_scalar_prefetch=0,
            grid=(N, n_h),
            in_specs=[x_spec, w_spec, b_spec],
            out_specs=out_spec,
        ),
        compiler_params=cparams,
    )(x_in, w_mat, b_col)

    # (N, Cout, H, 4W) has flat order (h, kh, w, kw) -> final NCHW is a FREE
    # reshape (no data movement).
    return y.reshape(N, Cout, 2 * H, 2 * W)


def _mxu_supported():
    """One-time compile probe for the MXU path (its lane-split reshape)."""
    global _MXU_PATH_OK
    if _MXU_PATH_OK is None:
        try:
            f32 = jnp.float32
            _up_impl.lower(
                jax.ShapeDtypeStruct((1, 32, 8, 64), f32),
                jax.ShapeDtypeStruct((32, 32, 2, 2), f32),
                jax.ShapeDtypeStruct((32,), f32),
                use_mxu=True, th=8,
            ).compile()
            _MXU_PATH_OK = True
        except Exception:
            _MXU_PATH_OK = False
    return _MXU_PATH_OK


def _plan(N, Cin, Cout, H, W, itemsize):
    """Pick the row tile and compute path (static, Python-level)."""
    W2, W4 = 2 * W, 4 * W
    # double-buffered x2 / out streams + ~8 f32 out-row-sized temporaries.
    per_row = (2 * Cin * W2 + 2 * Cout * W4) * itemsize + 8 * Cout * W4 * 4
    th_cap = max(8, (_stream_budget_bytes() // max(per_row, 1)) // 8 * 8)
    th = H if H <= th_cap else th_cap
    # v7x has 2 TensorCores: guarantee >= 2 parallel grid steps when batch == 1
    # (one extra grid step is negligible on the single-core v5e/v6e).
    if N == 1 and th >= H and H >= 16:
        half = max(8, (pl.cdiv(H, 2) + 7) // 8 * 8)
        if half < H:
            th = half
    # MXU path: large contraction, 128-aligned output rows, and a toolchain
    # that accepts the in-kernel lane-split reshape.  Everything else uses the
    # always-compiling VPU path (correct, possibly compute-heavier).
    use_mxu = (Cin > _VPU_MAX_CIN) and (W2 % 128 == 0) and _mxu_supported()
    return th, use_mxu


def up_forward(x, weight, bias):
    """SNUNet `up` (bilinear=False): ConvTranspose2d(in_ch, in_ch, 2, stride=2).

    x      : (N, Cin, H, W)    float32
    weight : (Cin, Cout, 2, 2) float32   (PyTorch ConvTranspose2d layout)
    bias   : (Cout,)           float32
    returns: (N, Cout, 2H, 2W) float32
    """
    N, Cin, H, W = x.shape
    Cout = weight.shape[1]
    th, use_mxu = _plan(N, Cin, Cout, H, W, jnp.dtype(x.dtype).itemsize)
    return _up_impl(x, weight, bias, use_mxu=use_mxu, th=th)


# --------------------------------------------------------------------------
# Reference + self-test
# --------------------------------------------------------------------------
def _reference(x_nchw, weight, bias):
    """Plain-JAX reference: out[n,co,2h+kh,2w+kw] = sum_ci x*W + b."""
    N, Cin, H, W = x_nchw.shape
    Cout = weight.shape[1]
    y = jnp.einsum("nchw,cokl->nhwklo", x_nchw, weight) + bias  # (N,H,W,kh,kw,Co)
    y = jnp.transpose(y, (0, 1, 3, 2, 4, 5)).reshape(N, 2 * H, 2 * W, Cout)
    return jnp.transpose(y, (0, 3, 1, 2))


if __name__ == "__main__":
    key = jax.random.PRNGKey(0)

    # ---- primary case (module-scale shapes): VPU path ----------------------
    N, Cin, H, W = 2, 4, 16, 16
    Cout = Cin  # ConvTranspose2d(in_ch, in_ch, ...)
    k1, k2, k3, key = jax.random.split(key, 4)
    x = jax.random.normal(k1, (N, Cin, H, W), dtype=jnp.float32)
    bound = 1.0 / jnp.sqrt(jnp.float32(Cin * 4))
    weight = jax.random.uniform(k2, (Cin, Cout, 2, 2), jnp.float32, -bound, bound)
    bias = jax.random.uniform(k3, (Cout,), jnp.float32, -bound, bound)

    out = jax.block_until_ready(up_forward(x, weight, bias))
    ref = _reference(x, weight, bias)
    assert out.shape == (N, Cout, 2 * H, 2 * W), out.shape
    assert jnp.allclose(out, ref, atol=1e-5, rtol=1e-5), "mismatch (VPU path)"

    # ---- secondary case: larger channels / image (MXU path when available) --
    N2, C2, H2, Wim2 = 1, 24, 64, 64
    k4, k5, k6 = jax.random.split(key, 3)
    x_b = jax.random.normal(k4, (N2, C2, H2, Wim2), dtype=jnp.float32)
    bound2 = 1.0 / jnp.sqrt(jnp.float32(C2 * 4))
    weight_b = jax.random.uniform(k5, (C2, C2, 2, 2), jnp.float32, -bound2, bound2)
    bias_b = jax.random.uniform(k6, (C2,), jnp.float32, -bound2, bound2)

    out_b = jax.block_until_ready(up_forward(x_b, weight_b, bias_b))
    ref_b = _reference(x_b, weight_b, bias_b)
    assert out_b.shape == (N2, C2, 2 * H2, 2 * Wim2), out_b.shape
    assert jnp.allclose(out_b, ref_b, atol=1e-3, rtol=1e-3), "mismatch (MXU path)"

    print("KERNEL_OK")
</pallas_src>

<mosaic_0001>
module attributes {stable_mosaic.version = 11 : i64} {
  func.func @kernel(%arg0: i32, %arg1: i32, %arg2: memref<1x4x16x32xf32, #tpu.memory_space<vmem>>, %arg3: memref<4x4x4xf32, #tpu.memory_space<vmem>>, %arg4: memref<4x1xf32, #tpu.memory_space<vmem>>, %arg5: memref<1x4x16x64xf32, #tpu.memory_space<vmem>>) attributes {dimension_semantics = [#tpu.dimension_semantics<parallel>, #tpu.dimension_semantics<parallel>], iteration_bounds = array<i64: 2, 1>, scalar_prefetch = 0 : i64, scratch_operands = 0 : i64, tpu.core_type = #tpu.core_type<tc>, window_params = [{transform_indices = @transform_0, window_bounds = array<i64: 1, 4, 16, 32>}, {pipeline_mode = #tpu.pipeline_mode<synchronous>, transform_indices = @transform_1, window_bounds = array<i64: 4, 4, 4>}, {pipeline_mode = #tpu.pipeline_mode<synchronous>, transform_indices = @transform_2, window_bounds = array<i64: 4, 1>}, {transform_indices = @transform_3, window_bounds = array<i64: 1, 4, 16, 64>}]} {
    %0 = tpu.iota {dimensions = array<i32: 2>} : vector<1x1x32xi32>
    %c2_i32 = arith.constant 2 : i32
    %c0_i32 = arith.constant 0 : i32
    %1 = arith.cmpi eq, %c2_i32, %c0_i32 : i32
    %c1_i32 = arith.constant 1 : i32
    %2 = arith.select %1, %c1_i32, %c2_i32 : i32
    %3 = vector.broadcast %2 : i32 to vector<1x1x32xi32>
    %4 = arith.remsi %0, %3 : vector<1x1x32xi32>
    %c0_i32_0 = arith.constant 0 : i32
    %5 = vector.broadcast %c0_i32_0 : i32 to vector<1x1x32xi32>
    %6 = arith.cmpi ne, %4, %5 : vector<1x1x32xi32>
    %c0_i32_1 = arith.constant 0 : i32
    %7 = vector.broadcast %c0_i32_1 : i32 to vector<1x1x32xi32>
    %8 = arith.cmpi slt, %4, %7 : vector<1x1x32xi32>
    %c0_i32_2 = arith.constant 0 : i32
    %9 = arith.cmpi slt, %2, %c0_i32_2 : i32
    %10 = vector.broadcast %9 : i1 to vector<1x1x32xi1>
    %11 = vector.broadcast %10 : vector<1x1x32xi1> to vector<1x1x32xi1>
    %12 = arith.xori %8, %11 : vector<1x1x32xi1>
    %13 = arith.andi %12, %6 : vector<1x1x32xi1>
    %14 = vector.broadcast %2 : i32 to vector<1x1x32xi32>
    %15 = arith.addi %4, %14 : vector<1x1x32xi32>
    %16 = arith.select %13, %15, %4 : vector<1x1x32xi1>, vector<1x1x32xi32>
    %c0_i32_3 = arith.constant 0 : i32
    %17 = vector.broadcast %c0_i32_3 : i32 to vector<1x1x32xi32>
    %18 = arith.cmpi eq, %16, %17 : vector<1x1x32xi32>
    %c0 = arith.constant 0 : index
    %c0_4 = arith.constant 0 : index
    %c0_5 = arith.constant 0 : index
    %19 = vector.load %arg3[%c0, %c0_4, %c0_5] : memref<4x4x4xf32, #tpu.memory_space<vmem>>, vector<1x4x4xf32>
    %20 = vector.shape_cast %19 : vector<1x4x4xf32> to vector<4x4xf32>
    %21 = vector.extract_strided_slice %20 {offsets = [0, 0], sizes = [4, 1], strides = [1, 1]} : vector<4x4xf32> to vector<4x1xf32>
    %22 = vector.shape_cast %21 : vector<4x1xf32> to vector<4x1x1xf32>
    %c0_6 = arith.constant 0 : index
    %c0_7 = arith.constant 0 : index
    %c0_8 = arith.constant 0 : index
    %c0_9 = arith.constant 0 : index
    %23 = vector.load %arg2[%c0_6, %c0_7, %c0_8, %c0_9] : memref<1x4x16x32xf32, #tpu.memory_space<vmem>>, vector<1x1x16x32xf32>
    %24 = vector.shape_cast %23 : vector<1x1x16x32xf32> to vector<16x32xf32>
    %25 = vector.shape_cast %24 : vector<16x32xf32> to vector<1x16x32xf32>
    %26 = vector.broadcast %22 : vector<4x1x1xf32> to vector<4x16x32xf32>
    %27 = vector.broadcast %25 : vector<1x16x32xf32> to vector<4x16x32xf32>
    %28 = arith.mulf %26, %27 : vector<4x16x32xf32>
    %29 = vector.extract_strided_slice %20 {offsets = [0, 1], sizes = [4, 1], strides = [1, 1]} : vector<4x4xf32> to vector<4x1xf32>
    %30 = vector.shape_cast %29 : vector<4x1xf32> to vector<4x1x1xf32>
    %c0_10 = arith.constant 0 : index
    %c1 = arith.constant 1 : index
    %c0_11 = arith.constant 0 : index
    %c0_12 = arith.constant 0 : index
    %31 = vector.load %arg2[%c0_10, %c1, %c0_11, %c0_12] : memref<1x4x16x32xf32, #tpu.memory_space<vmem>>, vector<1x1x16x32xf32>
    %32 = vector.shape_cast %31 : vector<1x1x16x32xf32> to vector<16x32xf32>
    %33 = vector.shape_cast %32 : vector<16x32xf32> to vector<1x16x32xf32>
    %34 = vector.broadcast %30 : vector<4x1x1xf32> to vector<4x16x32xf32>
    %35 = vector.broadcast %33 : vector<1x16x32xf32> to vector<4x16x32xf32>
    %36 = arith.mulf %34, %35 : vector<4x16x32xf32>
    %37 = vector.extract_strided_slice %20 {offsets = [0, 2], sizes = [4, 1], strides = [1, 1]} : vector<4x4xf32> to vector<4x1xf32>
    %38 = vector.shape_cast %37 : vector<4x1xf32> to vector<4x1x1xf32>
    %c0_13 = arith.constant 0 : index
    %c2 = arith.constant 2 : index
    %c0_14 = arith.constant 0 : index
    %c0_15 = arith.constant 0 : index
    %39 = vector.load %arg2[%c0_13, %c2, %c0_14, %c0_15] : memref<1x4x16x32xf32, #tpu.memory_space<vmem>>, vector<1x1x16x32xf32>
    %40 = vector.shape_cast %39 : vector<1x1x16x32xf32> to vector<16x32xf32>
    %41 = vector.shape_cast %40 : vector<16x32xf32> to vector<1x16x32xf32>
    %42 = vector.broadcast %38 : vector<4x1x1xf32> to vector<4x16x32xf32>
    %43 = vector.broadcast %41 : vector<1x16x32xf32> to vector<4x16x32xf32>
    %44 = arith.mulf %42, %43 : vector<4x16x32xf32>
    %45 = vector.extract_strided_slice %20 {offsets = [0, 3], sizes = [4, 1], strides = [1, 1]} : vector<4x4xf32> to vector<4x1xf32>
    %46 = vector.shape_cast %45 : vector<4x1xf32> to vector<4x1x1xf32>
    %c0_16 = arith.constant 0 : index
    %c3 = arith.constant 3 : index
    %c0_17 = arith.constant 0 : index
    %c0_18 = arith.constant 0 : index
    %47 = vector.load %arg2[%c0_16, %c3, %c0_17, %c0_18] : memref<1x4x16x32xf32, #tpu.memory_space<vmem>>, vector<1x1x16x32xf32>
    %48 = vector.shape_cast %47 : vector<1x1x16x32xf32> to vector<16x32xf32>
    %49 = vector.shape_cast %48 : vector<16x32xf32> to vector<1x16x32xf32>
    %50 = vector.broadcast %46 : vector<4x1x1xf32> to vector<4x16x32xf32>
    %51 = vector.broadcast %49 : vector<1x16x32xf32> to vector<4x16x32xf32>
    %52 = arith.mulf %50, %51 : vector<4x16x32xf32>
    %53 = arith.addf %28, %36 : vector<4x16x32xf32>
    %54 = arith.addf %44, %52 : vector<4x16x32xf32>
    %55 = arith.addf %53, %54 : vector<4x16x32xf32>
    %c1_19 = arith.constant 1 : index
    %c0_20 = arith.constant 0 : index
    %c0_21 = arith.constant 0 : index
    %56 = vector.load %arg3[%c1_19, %c0_20, %c0_21] : memref<4x4x4xf32, #tpu.memory_space<vmem>>, vector<1x4x4xf32>
    %57 = vector.shape_cast %56 : vector<1x4x4xf32> to vector<4x4xf32>
    %58 = vector.extract_strided_slice %57 {offsets = [0, 0], sizes = [4, 1], strides = [1, 1]} : vector<4x4xf32> to vector<4x1xf32>
    %59 = vector.shape_cast %58 : vector<4x1xf32> to vector<4x1x1xf32>
    %c0_22 = arith.constant 0 : index
    %c0_23 = arith.constant 0 : index
    %c0_24 = arith.constant 0 : index
    %c0_25 = arith.constant 0 : index
    %60 = vector.load %arg2[%c0_22, %c0_23, %c0_24, %c0_25] : memref<1x4x16x32xf32, #tpu.memory_space<vmem>>, vector<1x1x16x32xf32>
    %61 = vector.shape_cast %60 : vector<1x1x16x32xf32> to vector<16x32xf32>
    %62 = vector.shape_cast %61 : vector<16x32xf32> to vector<1x16x32xf32>
    %63 = vector.broadcast %59 : vector<4x1x1xf32> to vector<4x16x32xf32>
    %64 = vector.broadcast %62 : vector<1x16x32xf32> to vector<4x16x32xf32>
    %65 = arith.mulf %63, %64 : vector<4x16x32xf32>
    %66 = vector.extract_strided_slice %57 {offsets = [0, 1], sizes = [4, 1], strides = [1, 1]} : vector<4x4xf32> to vector<4x1xf32>
    %67 = vector.shape_cast %66 : vector<4x1xf32> to vector<4x1x1xf32>
    %c0_26 = arith.constant 0 : index
    %c1_27 = arith.constant 1 : index
    %c0_28 = arith.constant 0 : index
    %c0_29 = arith.constant 0 : index
    %68 = vector.load %arg2[%c0_26, %c1_27, %c0_28, %c0_29] : memref<1x4x16x32xf32, #tpu.memory_space<vmem>>, vector<1x1x16x32xf32>
    %69 = vector.shape_cast %68 : vector<1x1x16x32xf32> to vector<16x32xf32>
    %70 = vector.shape_cast %69 : vector<16x32xf32> to vector<1x16x32xf32>
    %71 = vector.broadcast %67 : vector<4x1x1xf32> to vector<4x16x32xf32>
    %72 = vector.broadcast %70 : vector<1x16x32xf32> to vector<4x16x32xf32>
    %73 = arith.mulf %71, %72 : vector<4x16x32xf32>
    %74 = vector.extract_strided_slice %57 {offsets = [0, 2], sizes = [4, 1], strides = [1, 1]} : vector<4x4xf32> to vector<4x1xf32>
    %75 = vector.shape_cast %74 : vector<4x1xf32> to vector<4x1x1xf32>
    %c0_30 = arith.constant 0 : index
    %c2_31 = arith.constant 2 : index
    %c0_32 = arith.constant 0 : index
    %c0_33 = arith.constant 0 : index
    %76 = vector.load %arg2[%c0_30, %c2_31, %c0_32, %c0_33] : memref<1x4x16x32xf32, #tpu.memory_space<vmem>>, vector<1x1x16x32xf32>
    %77 = vector.shape_cast %76 : vector<1x1x16x32xf32> to vector<16x32xf32>
    %78 = vector.shape_cast %77 : vector<16x32xf32> to vector<1x16x32xf32>
    %79 = vector.broadcast %75 : vector<4x1x1xf32> to vector<4x16x32xf32>
    %80 = vector.broadcast %78 : vector<1x16x32xf32> to vector<4x16x32xf32>
    %81 = arith.mulf %79, %80 : vector<4x16x32xf32>
    %82 = vector.extract_strided_slice %57 {offsets = [0, 3], sizes = [4, 1], strides = [1, 1]} : vector<4x4xf32> to vector<4x1xf32>
    %83 = vector.shape_cast %82 : vector<4x1xf32> to vector<4x1x1xf32>
    %c0_34 = arith.constant 0 : index
    %c3_35 = arith.constant 3 : index
    %c0_36 = arith.constant 0 : index
    %c0_37 = arith.constant 0 : index
    %84 = vector.load %arg2[%c0_34, %c3_35, %c0_36, %c0_37] : memref<1x4x16x32xf32, #tpu.memory_space<vmem>>, vector<1x1x16x32xf32>
    %85 = vector.shape_cast %84 : vector<1x1x16x32xf32> to vector<16x32xf32>
    %86 = vector.shape_cast %85 : vector<16x32xf32> to vector<1x16x32xf32>
    %87 = vector.broadcast %83 : vector<4x1x1xf32> to vector<4x16x32xf32>
    %88 = vector.broadcast %86 : vector<1x16x32xf32> to vector<4x16x32xf32>
    %89 = arith.mulf %87, %88 : vector<4x16x32xf32>
    %90 = arith.addf %65, %73 : vector<4x16x32xf32>
    %91 = arith.addf %81, %89 : vector<4x16x32xf32>
    %92 = arith.addf %90, %91 : vector<4x16x32xf32>
    %c2_38 = arith.constant 2 : index
    %c0_39 = arith.constant 0 : index
    %c0_40 = arith.constant 0 : index
    %93 = vector.load %arg3[%c2_38, %c0_39, %c0_40] : memref<4x4x4xf32, #tpu.memory_space<vmem>>, vector<1x4x4xf32>
    %94 = vector.shape_cast %93 : vector<1x4x4xf32> to vector<4x4xf32>
    %95 = vector.extract_strided_slice %94 {offsets = [0, 0], sizes = [4, 1], strides = [1, 1]} : vector<4x4xf32> to vector<4x1xf32>
    %96 = vector.shape_cast %95 : vector<4x1xf32> to vector<4x1x1xf32>
    %c0_41 = arith.constant 0 : index
    %c0_42 = arith.constant 0 : index
    %c0_43 = arith.constant 0 : index
    %c0_44 = arith.constant 0 : index
    %97 = vector.load %arg2[%c0_41, %c0_42, %c0_43, %c0_44] : memref<1x4x16x32xf32, #tpu.memory_space<vmem>>, vector<1x1x16x32xf32>
    %98 = vector.shape_cast %97 : vector<1x1x16x32xf32> to vector<16x32xf32>
    %99 = vector.shape_cast %98 : vector<16x32xf32> to vector<1x16x32xf32>
    %100 = vector.broadcast %96 : vector<4x1x1xf32> to vector<4x16x32xf32>
    %101 = vector.broadcast %99 : vector<1x16x32xf32> to vector<4x16x32xf32>
    %102 = arith.mulf %100, %101 : vector<4x16x32xf32>
    %103 = vector.extract_strided_slice %94 {offsets = [0, 1], sizes = [4, 1], strides = [1, 1]} : vector<4x4xf32> to vector<4x1xf32>
    %104 = vector.shape_cast %103 : vector<4x1xf32> to vector<4x1x1xf32>
    %c0_45 = arith.constant 0 : index
    %c1_46 = arith.constant 1 : index
    %c0_47 = arith.constant 0 : index
    %c0_48 = arith.constant 0 : index
    %105 = vector.load %arg2[%c0_45, %c1_46, %c0_47, %c0_48] : memref<1x4x16x32xf32, #tpu.memory_space<vmem>>, vector<1x1x16x32xf32>
    %106 = vector.shape_cast %105 : vector<1x1x16x32xf32> to vector<16x32xf32>
    %107 = vector.shape_cast %106 : vector<16x32xf32> to vector<1x16x32xf32>
    %108 = vector.broadcast %104 : vector<4x1x1xf32> to vector<4x16x32xf32>
    %109 = vector.broadcast %107 : vector<1x16x32xf32> to vector<4x16x32xf32>
    %110 = arith.mulf %108, %109 : vector<4x16x32xf32>
    %111 = vector.extract_strided_slice %94 {offsets = [0, 2], sizes = [4, 1], strides = [1, 1]} : vector<4x4xf32> to vector<4x1xf32>
    %112 = vector.shape_cast %111 : vector<4x1xf32> to vector<4x1x1xf32>
    %c0_49 = arith.constant 0 : index
    %c2_50 = arith.constant 2 : index
    %c0_51 = arith.constant 0 : index
    %c0_52 = arith.constant 0 : index
    %113 = vector.load %arg2[%c0_49, %c2_50, %c0_51, %c0_52] : memref<1x4x16x32xf32, #tpu.memory_space<vmem>>, vector<1x1x16x32xf32>
    %114 = vector.shape_cast %113 : vector<1x1x16x32xf32> to vector<16x32xf32>
    %115 = vector.shape_cast %114 : vector<16x32xf32> to vector<1x16x32xf32>
    %116 = vector.broadcast %112 : vector<4x1x1xf32> to vector<4x16x32xf32>
    %117 = vector.broadcast %115 : vector<1x16x32xf32> to vector<4x16x32xf32>
    %118 = arith.mulf %116, %117 : vector<4x16x32xf32>
    %119 = vector.extract_strided_slice %94 {offsets = [0, 3], sizes = [4, 1], strides = [1, 1]} : vector<4x4xf32> to vector<4x1xf32>
    %120 = vector.shape_cast %119 : vector<4x1xf32> to vector<4x1x1xf32>
    %c0_53 = arith.constant 0 : index
    %c3_54 = arith.constant 3 : index
    %c0_55 = arith.constant 0 : index
    %c0_56 = arith.constant 0 : index
    %121 = vector.load %arg2[%c0_53, %c3_54, %c0_55, %c0_56] : memref<1x4x16x32xf32, #tpu.memory_space<vmem>>, vector<1x1x16x32xf32>
    %122 = vector.shape_cast %121 : vector<1x1x16x32xf32> to vector<16x32xf32>
    %123 = vector.shape_cast %122 : vector<16x32xf32> to vector<1x16x32xf32>
    %124 = vector.broadcast %120 : vector<4x1x1xf32> to vector<4x16x32xf32>
    %125 = vector.broadcast %123 : vector<1x16x32xf32> to vector<4x16x32xf32>
    %126 = arith.mulf %124, %125 : vector<4x16x32xf32>
    %127 = arith.addf %102, %110 : vector<4x16x32xf32>
    %128 = arith.addf %118, %126 : vector<4x16x32xf32>
    %129 = arith.addf %127, %128 : vector<4x16x32xf32>
    %c3_57 = arith.constant 3 : index
    %c0_58 = arith.constant 0 : index
    %c0_59 = arith.constant 0 : index
    %130 = vector.load %arg3[%c3_57, %c0_58, %c0_59] : memref<4x4x4xf32, #tpu.memory_space<vmem>>, vector<1x4x4xf32>
    %131 = vector.shape_cast %130 : vector<1x4x4xf32> to vector<4x4xf32>
    %132 = vector.extract_strided_slice %131 {offsets = [0, 0], sizes = [4, 1], strides = [1, 1]} : vector<4x4xf32> to vector<4x1xf32>
    %133 = vector.shape_cast %132 : vector<4x1xf32> to vector<4x1x1xf32>
    %c0_60 = arith.constant 0 : index
    %c0_61 = arith.constant 0 : index
    %c0_62 = arith.constant 0 : index
    %c0_63 = arith.constant 0 : index
    %134 = vector.load %arg2[%c0_60, %c0_61, %c0_62, %c0_63] : memref<1x4x16x32xf32, #tpu.memory_space<vmem>>, vector<1x1x16x32xf32>
    %135 = vector.shape_cast %134 : vector<1x1x16x32xf32> to vector<16x32xf32>
    %136 = vector.shape_cast %135 : vector<16x32xf32> to vector<1x16x32xf32>
    %137 = vector.broadcast %133 : vector<4x1x1xf32> to vector<4x16x32xf32>
    %138 = vector.broadcast %136 : vector<1x16x32xf32> to vector<4x16x32xf32>
    %139 = arith.mulf %137, %138 : vector<4x16x32xf32>
    %140 = vector.extract_strided_slice %131 {offsets = [0, 1], sizes = [4, 1], strides = [1, 1]} : vector<4x4xf32> to vector<4x1xf32>
    %141 = vector.shape_cast %140 : vector<4x1xf32> to vector<4x1x1xf32>
    %c0_64 = arith.constant 0 : index
    %c1_65 = arith.constant 1 : index
    %c0_66 = arith.constant 0 : index
    %c0_67 = arith.constant 0 : index
    %142 = vector.load %arg2[%c0_64, %c1_65, %c0_66, %c0_67] : memref<1x4x16x32xf32, #tpu.memory_space<vmem>>, vector<1x1x16x32xf32>
    %143 = vector.shape_cast %142 : vector<1x1x16x32xf32> to vector<16x32xf32>
    %144 = vector.shape_cast %143 : vector<16x32xf32> to vector<1x16x32xf32>
    %145 = vector.broadcast %141 : vector<4x1x1xf32> to vector<4x16x32xf32>
    %146 = vector.broadcast %144 : vector<1x16x32xf32> to vector<4x16x32xf32>
    %147 = arith.mulf %145, %146 : vector<4x16x32xf32>
    %148 = vector.extract_strided_slice %131 {offsets = [0, 2], sizes = [4, 1], strides = [1, 1]} : vector<4x4xf32> to vector<4x1xf32>
    %149 = vector.shape_cast %148 : vector<4x1xf32> to vector<4x1x1xf32>
    %c0_68 = arith.constant 0 : index
    %c2_69 = arith.constant 2 : index
    %c0_70 = arith.constant 0 : index
    %c0_71 = arith.constant 0 : index
    %150 = vector.load %arg2[%c0_68, %c2_69, %c0_70, %c0_71] : memref<1x4x16x32xf32, #tpu.memory_space<vmem>>, vector<1x1x16x32xf32>
    %151 = vector.shape_cast %150 : vector<1x1x16x32xf32> to vector<16x32xf32>
    %152 = vector.shape_cast %151 : vector<16x32xf32> to vector<1x16x32xf32>
    %153 = vector.broadcast %149 : vector<4x1x1xf32> to vector<4x16x32xf32>
    %154 = vector.broadcast %152 : vector<1x16x32xf32> to vector<4x16x32xf32>
    %155 = arith.mulf %153, %154 : vector<4x16x32xf32>
    %156 = vector.extract_strided_slice %131 {offsets = [0, 3], sizes = [4, 1], strides = [1, 1]} : vector<4x4xf32> to vector<4x1xf32>
    %157 = vector.shape_cast %156 : vector<4x1xf32> to vector<4x1x1xf32>
    %c0_72 = arith.constant 0 : index
    %c3_73 = arith.constant 3 : index
    %c0_74 = arith.constant 0 : index
    %c0_75 = arith.constant 0 : index
    %158 = vector.load %arg2[%c0_72, %c3_73, %c0_74, %c0_75] : memref<1x4x16x32xf32, #tpu.memory_space<vmem>>, vector<1x1x16x32xf32>
    %159 = vector.shape_cast %158 : vector<1x1x16x32xf32> to vector<16x32xf32>
    %160 = vector.shape_cast %159 : vector<16x32xf32> to vector<1x16x32xf32>
    %161 = vector.broadcast %157 : vector<4x1x1xf32> to vector<4x16x32xf32>
    %162 = vector.broadcast %160 : vector<1x16x32xf32> to vector<4x16x32xf32>
    %163 = arith.mulf %161, %162 : vector<4x16x32xf32>
    %164 = arith.addf %139, %147 : vector<4x16x32xf32>
    %165 = arith.addf %155, %163 : vector<4x16x32xf32>
    %166 = arith.addf %164, %165 : vector<4x16x32xf32>
    %c0_76 = arith.constant 0 : index
    %c0_77 = arith.constant 0 : index
    %167 = vector.load %arg4[%c0_76, %c0_77] : memref<4x1xf32, #tpu.memory_space<vmem>>, vector<4x1xf32>
    %168 = vector.shape_cast %167 : vector<4x1xf32> to vector<4x1x1xf32>
    %169 = vector.shape_cast %18 : vector<1x1x32xi1> to vector<1x1x32xi1>
    %170 = vector.broadcast %169 : vector<1x1x32xi1> to vector<4x16x32xi1>
    %171 = arith.select %170, %55, %92 : vector<4x16x32xi1>, vector<4x16x32xf32>
    %172 = vector.broadcast %168 : vector<4x1x1xf32> to vector<4x16x32xf32>
    %173 = arith.addf %171, %172 : vector<4x16x32xf32>
    %174 = vector.shape_cast %18 : vector<1x1x32xi1> to vector<1x1x32xi1>
    %175 = vector.broadcast %174 : vector<1x1x32xi1> to vector<4x16x32xi1>
    %176 = arith.select %175, %129, %166 : vector<4x16x32xi1>, vector<4x16x32xf32>
    %177 = vector.broadcast %168 : vector<4x1x1xf32> to vector<4x16x32xf32>
    %178 = arith.addf %176, %177 : vector<4x16x32xf32>
    %179 = tpu.concatenate %173, %178 in 2 : vector<4x16x32xf32>, vector<4x16x32xf32> -> vector<4x16x64xf32>
    %c0_78 = arith.constant 0 : index
    %c0_79 = arith.constant 0 : index
    %c0_80 = arith.constant 0 : index
    %c0_81 = arith.constant 0 : index
    %180 = vector.load %arg5[%c0_78, %c0_79, %c0_80, %c0_81] : memref<1x4x16x64xf32, #tpu.memory_space<vmem>>, vector<1x4x16x64xf32>
    %181 = vector.shape_cast %180 : vector<1x4x16x64xf32> to vector<4x16x64xf32>
    %182 = vector.shape_cast %179 : vector<4x16x64xf32> to vector<1x4x16x64xf32>
    tpu.vector_store %arg5[%c0_78, %c0_79, %c0_80, %c0_81], %182 {strides = array<i32>} : memref<1x4x16x64xf32, #tpu.memory_space<vmem>>, vector<1x4x16x64xf32>,
    return
  }
  func.func @transform_0(%arg0: i32, %arg1: i32) -> (i32, i32, i32, i32) {
    %c0_i32 = arith.constant 0 : i32
    %c0_i32_0 = arith.constant 0 : i32
    %c0_i32_1 = arith.constant 0 : i32
    return %arg0, %c0_i32, %arg1, %c0_i32_0 : i32, i32, i32, i32
  }
  func.func @transform_1(%arg0: i32, %arg1: i32) -> (i32, i32, i32) {
    %c0_i32 = arith.constant 0 : i32
    %c0_i32_0 = arith.constant 0 : i32
    %c0_i32_1 = arith.constant 0 : i32
    %c0_i32_2 = arith.constant 0 : i32
    return %c0_i32, %c0_i32_0, %c0_i32_1 : i32, i32, i32
  }
  func.func @transform_2(%arg0: i32, %arg1: i32) -> (i32, i32) {
    %c0_i32 = arith.constant 0 : i32
    %c0_i32_0 = arith.constant 0 : i32
    %c0_i32_1 = arith.constant 0 : i32
    return %c0_i32, %c0_i32_0 : i32, i32
  }
  func.func @transform_3(%arg0: i32, %arg1: i32) -> (i32, i32, i32, i32) {
    %c0_i32 = arith.constant 0 : i32
    %c0_i32_0 = arith.constant 0 : i32
    %c0_i32_1 = arith.constant 0 : i32
    return %arg0, %c0_i32, %arg1, %c0_i32_0 : i32, i32, i32, i32
  }
}

</mosaic_0001>

<bundles_post_ra>
// kernel: _up_impl.1
= control target key start
LH: loop header
LB: loop body
LE: loop exit
PB: predicated region body
PF: predicated region fallthrough
CT: control target
= control target key end

     0   :  { %s1246_s12 = smov 0   ;;  %s1248_s13 = smov 0   ;;  %s1870_s0 = inlined_call_operand.vmem [shape: f32[2,4,16,32], index: 0, kind: input, shape index: {}]   ;;  %s1871_s1 = inlined_call_operand.vmem [shape: f32[4,4,4], index: 1, kind: input, shape index: {}]   ;;  %s1872_s2 = inlined_call_operand.vmem [shape: f32[4,1], index: 2, kind: input, shape index: {}]   ;;  %s1873_s3 = inlined_call_operand.vmem [shape: f32[2,4,16,64], index: 3, kind: output, shape index: {}]  }
   0x1   :  { %s1250_s14 = smov 0  }
   0x2 LB: > { %s25_s15 = sadd.s32 1, %s1214_s13  ;;  %p1120_p0 = scmp.ge.s32.totalorder %s1218_s14, 1  ;;  %s1218_s14 = sphi %s1250_s14, %s13_s14   ;;  %s1214_s13 = sphi %s1248_s13, %s1933_s13   ;;  %s1210_s12 = sphi %s1246_s12, %s1932_s12  }
   0x3   : > { %p27_p1 = scmp.ge.s32.totalorder %s25_s15, 2  ;;  %p158_p2 = scmp.lt.s32.totalorder %s1218_s14, 3 }
   0x5   : > { %s1935_s15 = smov (%p27_p1, %s25_s15), 0  ;;  %p159_p3 = pnand %p1120_p0, %p158_p2 }
   0x7   : > { %162 = sbr.rel (%p159_p3) target bundleno = 458 (0x1ca), region = 32 }
   0xe   : > { %v210_v0 = vlaneseq  ;;  %v1220_v1 = vmov 1   ;;  %v1221_v2 = vmov 0   ;;  %v1125_v3 = vld.sshfl [vmem:[%s1871_s1] sm:$0x33 pattern:$0x75316420] }
   0xf   : > { %1174 = vset.pattern.permute.xlu1 %v1220_v1  ;;  %1173 = vset.pattern.permute.xlu0 %v1221_v2  ;;  %v1222_v4 = vmov 1966171168   ;;  %v234_v7 = vcombine.high %v1125_v3, %v1125_v3  ;;  %v1133_v9 = vld.sshfl [vmem:[%s1871_s1 + $0x4] sm:$0x33 pattern:$0x75316420] }
  0x10   : > { %v236_v5 = vunpack.c.l.s4 %v1222_v4  ;;  %v239_v6 = vshrl.u32 %v210_v0, 7  ;;  %v1282_v12 = vld.sshfl [vmem:[%s1872_s2] sm:$0x33 pattern:$0x75316420]  ;;  %v408_v15 = vcombine.high %v1133_v9, %v1133_v9  ;;  %v1223_v38 = vmov 2  }
  0x11   : > { %v1135_v16 = vld.sshfl [vmem:[%s1871_s1 + $0x8] sm:$0x33 pattern:$0x75316420]  ;;  %v896_v20 = vcombine.high %v1282_v12, %v1282_v12  ;;  %v1224_v44 = vmov 3   ;;  %p191_p4 = scmp.lt.s32.totalorder %s1210_s12, 1 }
  0x12   : > { %v237_v8 = vunpack.c.0.s8 %v236_v5  ;;  %v1277_v11 = vsub.s32 0, %v239_v6  ;;  %v571_v22 = vcombine.high %v1135_v16, %v1135_v16  ;;  %v1137_v23 = vld.sshfl [vmem:[%s1871_s1 + $0xc] sm:$0x33 pattern:$0x75316420]  ;;  %s1225_s30 = smov 32  }
  0x13   : > { %v734_v28 = vcombine.high %v1137_v23, %v1137_v23  ;;  %s1937_s12 = smov (!%p191_p4, %s1210_s12), 1  ;;  %vm1011_vm1 = vcmask 261120   ;;  %vm1020_vm2 = vcmask 523264  }
  0x14   : > { %v1275_v10 = vsub.s32 %v237_v8, %v239_v6  ;;  %s1141_s26 = sshll.u32 %s1937_s12, 6 }
  0x15   : > { %s1410_s29 = scalar_lea.vmem %s1870_s0, %s1141_s26  ;;  %s208_s6 = scalar_lea.vmem %s1873_s3, %s1141_s26 }
  0x16   : > { %v248_v13 = vrot.slane %v234_v7, %v1275_v10  ;;  %v241_v14 = vrot.slane %v1125_v3, %v1275_v10  ;;  %v422_v21 = vrot.slane %v408_v15, %v1275_v10  ;;  %v741_v26 = vrot.slane %v1137_v23, %v1275_v10  ;;  %v1413_v63 = vld [vmem:[%s1410_s29 + $0x10] sm:$0xff]  ;;  %v1417_v3 = vld [vmem:[%s1410_s29 + $0x18] sm:$0xff]  ;;  %v1420_v4 = vld [vmem:[%s1410_s29] sm:$0xff] }
  0x17   : > { %v1306_v27 = vrot.slane %v896_v20, %v1275_v10  ;;  %v585_v31 = vrot.slane %v571_v22, %v1275_v10  ;;  %v748_v36 = vrot.slane %v734_v28, %v1275_v10  ;;  %v415_v39 = vrot.slane %v1133_v9, %v1275_v10  ;;  %v1423_v5 = vld [vmem:[%s1410_s29 + $0x8] sm:$0xff] }
  0x18   : > { %v1290_v17 = vrot.slane %v248_v13, %v1277_v11  ;;  %v1293_v18 = vrot.slane %v241_v14, %v1277_v11  ;;  %v249_v19 = vcombine.high %v241_v14, %v241_v14  ;;  %v250_v25 = vcombine.high %v248_v13, %v248_v13 }
  0x19   : > { %v749_v29 = vcombine.high %v741_v26, %v741_v26  ;;  %v1311_v30 = vrot.slane %v422_v21, %v1277_v11  ;;  %v930_v32 = vrot.slane %v1306_v27, %v1277_v11  ;;  %v1324_v35 = vrot.slane %v585_v31, %v1277_v11 }
  0x1a   : > { %301 = vperm.xlu1 %1174, %v1290_v17   ;;  %270 = vperm.xlu0 %1173, %v1293_v18   ;;  %v264_v24 = vrot.slane %v249_v19, %v1277_v11  ;;  %v1317_v33 = vrot.slane %v250_v25, %v1277_v11  ;;  %v1330_v37 = vrot.slane %v748_v36, %v1277_v11 }
  0x1b   : > { %v1320_v34 = vrot.slane %v749_v29, %v1277_v11  ;;  %v428_v40 = vrot.slane %v415_v39, %v1277_v11  ;;  %v424_v41 = vcombine.high %v422_v21, %v422_v21  ;;  %v578_v43 = vrot.slane %v1135_v16, %v1275_v10 }
  0x1c   : > { %v587_v46 = vcombine.high %v585_v31, %v585_v31  ;;  %v423_v48 = vcombine.high %v415_v39, %v415_v39  ;;  %v1350_v49 = vrot.slane %v741_v26, %v1277_v11  ;;  %v750_v51 = vcombine.high %v748_v36, %v748_v36 }
  0x1d   : > { %v440_v42 = vrot.slane %v424_v41, %v1277_v11  ;;  %v591_v45 = vrot.slane %v578_v43, %v1277_v11  ;;  %v1355_v52 = vrot.slane %v1282_v12, %v1275_v10  ;;  %v912_v57 = vcombine.high %v1306_v27, %v1306_v27 }
  0x1e   : > { %1175 = vset.pattern.permute.xlu1 %v1221_v2  ;;  %274 = vperm.xlu0 %1173, %v1290_v17   ;;  %v603_v47 = vrot.slane %v587_v46, %v1277_v11  ;;  %v436_v50 = vrot.slane %v423_v48, %v1277_v11  ;;  %v1361_v54 = vrot.slane %v750_v51, %v1277_v11  ;;  %v1474_v48 = vld [vmem:[%s1410_s29 + $0x20] sm:$0xff]  ;;  %v1483_v51 = vld [vmem:[%s1410_s29 + $0x38] sm:$0xff] }
  0x1f   : > { %278 = vperm.xlu1 %1175, %v264_v24   ;;  %v926_v53 = vrot.slane %v1355_v52, %v1277_v11  ;;  %v911_v55 = vcombine.high %v1355_v52, %v1355_v52  ;;  %v1372_v58 = vrot.slane %v912_v57, %v1277_v11  ;;  %v586_v59 = vcombine.high %v578_v43, %v578_v43 }
  0x21   : > { %v1366_v56 = vrot.slane %v911_v55, %v1277_v11  ;;  %v599_v60 = vrot.slane %v586_v59, %v1277_v11 }
  0x22   : > { %446 = vperm.xlu0 %1173, %v1311_v30  }
  0x23   : > { %282 = vperm.xlu1 %1175, %v1317_v33  }
  0x26   : > { %609 = vperm.xlu0 %1173, %v1324_v35  }
  0x27   : > { %1176 = vset.pattern.permute.xlu1 %v1220_v1 }
  0x28   : > { %305 = vperm.xlu1 %1176, %v264_v24  }
  0x2a   : > { %772 = vperm.xlu0 %1173, %v1330_v37  }
  0x2c   : > { %1177 = vset.pattern.permute.xlu1 %v1223_v38 }
  0x2d   : > { %324 = vperm.xlu1 %1177, %v1293_v18  }
  0x2e   : > { %1188 = vset.pattern.permute.xlu0 %v1220_v1 }
  0x2f   : > { %297 = vperm.xlu0 %1188, %v1293_v18  }
  0x31   : > { %332 = vperm.xlu1 %1177, %v264_v24  }
  0x33   : > { %309 = vperm.xlu0 %1188, %v1317_v33  }
  0x35   : > { %336 = vperm.xlu1 %1177, %v1317_v33  }
  0x37   : > { %466 = vperm.xlu0 %1188, %v428_v40  }
  0x39   : > { %1178 = vset.pattern.permute.xlu1 %v1224_v44 }
  0x3a   : > { %355 = vperm.xlu1 %1178, %v1290_v17  }
  0x3b   : > { %478 = vperm.xlu0 %1188, %v440_v42  }
  0x3e   : > { %359 = vperm.xlu1 %1178, %v264_v24  }
  0x3f   : > { %629 = vperm.xlu0 %1188, %v591_v45  }
  0x42   : > { %1179 = vset.pattern.permute.xlu1 %v1221_v2 }
  0x43   : > { %641 = vperm.xlu0 %1188, %v603_v47   ;;  %442 = vperm.xlu1 %1179, %v428_v40  }
  0x47   : > { %792 = vperm.xlu0 %1188, %v1350_v49   ;;  %450 = vperm.xlu1 %1179, %v436_v50  }
  0x4b   : > { %804 = vperm.xlu0 %1188, %v1361_v54   ;;  %454 = vperm.xlu1 %1179, %v440_v42  }
  0x4f   : > { %1190 = vset.pattern.permute.xlu0 %v1223_v38  ;;  %1180 = vset.pattern.permute.xlu1 %v1220_v1 }
  0x50   : > { %328 = vperm.xlu0 %1190, %v1290_v17   ;;  %470 = vperm.xlu1 %1180, %v1311_v30  }
  0x54   : > { %494 = vperm.xlu0 %1190, %v1311_v30   ;;  %474 = vperm.xlu1 %1180, %v436_v50  }
  0x58   : > { %657 = vperm.xlu0 %1190, %v1324_v35   ;;  %1181 = vset.pattern.permute.xlu1 %v1223_v38 }
  0x59   : > { %490 = vperm.xlu1 %1181, %v428_v40  }
  0x5c   : > { %820 = vperm.xlu0 %1190, %v1330_v37  }
  0x5d   : > { %498 = vperm.xlu1 %1181, %v436_v50  }
  0x60   : > { %1192 = vset.pattern.permute.xlu0 %v1224_v44 }
  0x61   : > { %351 = vperm.xlu0 %1192, %v1293_v18   ;;  %502 = vperm.xlu1 %1181, %v440_v42  }
  0x65   : > { %363 = vperm.xlu0 %1192, %v1317_v33   ;;  %1182 = vset.pattern.permute.xlu1 %v1224_v44 }
  0x66   : > { %518 = vperm.xlu1 %1182, %v1311_v30  }
  0x69   : > { %514 = vperm.xlu0 %1192, %v428_v40  }
  0x6a   : > { %522 = vperm.xlu1 %1182, %v436_v50   ;;  %v1480_v50 = vld [vmem:[%s1410_s29 + $0x30] sm:$0xff] }
  0x6d   : > { %526 = vperm.xlu0 %1192, %v440_v42  }
  0x6e   : > { %1183 = vset.pattern.permute.xlu1 %v1221_v2 }
  0x6f   : > { %605 = vperm.xlu1 %1183, %v591_v45  }
  0x71   : > { %677 = vperm.xlu0 %1192, %v591_v45  }
  0x73   : > { %613 = vperm.xlu1 %1183, %v599_v60  }
  0x75   : > { %689 = vperm.xlu0 %1192, %v603_v47  }
  0x77   : > { %617 = vperm.xlu1 %1183, %v603_v47  }
  0x79   : > { %840 = vperm.xlu0 %1192, %v1350_v49  }
  0x7b   : > { %1184 = vset.pattern.permute.xlu1 %v1220_v1 }
  0x7c   : > { %633 = vperm.xlu1 %1184, %v1324_v35  }
  0x7d   : > { %852 = vperm.xlu0 %1192, %v1361_v54  }
  0x80   : > { %637 = vperm.xlu1 %1184, %v599_v60  }
  0x81   : > { %1195 = vset.pattern.permute.xlu0 %v1221_v2 }
  0x82   : > { %944 = vperm.xlu0 %1195, %v930_v32  }
  0x84   : > { %1185 = vset.pattern.permute.xlu1 %v1223_v38 }
  0x85   : > { %653 = vperm.xlu1 %1185, %v591_v45  }
  0x89   : > { %661 = vperm.xlu1 %1185, %v599_v60  }
  0x8d   : > { %665 = vperm.xlu1 %1185, %v603_v47  }
  0x91   : > { %1186 = vset.pattern.permute.xlu1 %v1224_v44 }
  0x92   : > { %681 = vperm.xlu1 %1186, %v1324_v35  }
  0x96   : > { %685 = vperm.xlu1 %1186, %v599_v60  }
  0x99   : > { %v302_v61 = vpop.permute.xlu1 %301  ;;  %v271_v62 = vpop.permute.xlu0 %270 }
  0x9a   : > { %1187 = vset.pattern.permute.xlu1 %v1221_v2  ;;  %v314_v7 = vmul.f32 %v1413_v63, %v302_v61  ;;  %v315_v8 = vmul.f32 %v1417_v3, %v302_v61  ;;  %v286_v27 = vmul.f32 %v271_v62, %v1423_v5 }
  0x9b   : > { %768 = vperm.xlu1 %1187, %v1350_v49  }
  0x9d   : > { %v275_v6 = vpop.permute.xlu0 %274 }
  0x9e   : > { %v287_v9 = vmul.f32 %v275_v6, %v1420_v4  ;;  %v288_v10 = vmul.f32 %v275_v6, %v1423_v5  ;;  %v279_v12 = vpop.permute.xlu1 %278 }
  0x9f   : > { %776 = vperm.xlu1 %1187, %v1320_v34   ;;  %v289_v19 = vmul.f32 %v279_v12, %v1420_v4  ;;  %v290_v20 = vmul.f32 %v279_v12, %v1423_v5 }
  0xa0   : > { %v1431_v13 = vadd.f32 %v314_v7, %v287_v9  ;;  %v1433_v14 = vadd.f32 %v315_v8, %v288_v10 }
  0xa1   : > { %v1435_v15 = vpop.permute.xlu0 %446 }
  0xa2   : > { %v283_v16 = vpop.permute.xlu1 %282  ;;  %v459_v11 = vmul.f32 %v1435_v15, %v1420_v4  ;;  %v460_v52 = vmul.f32 %v1435_v15, %v1423_v5 }
  0xa3   : > { %780 = vperm.xlu1 %1187, %v1361_v54   ;;  %v291_v36 = vmul.f32 %v283_v16, %v1420_v4  ;;  %v292_v39 = vmul.f32 %v283_v16, %v1423_v5 }
  0xa5   : > { %v1438_v17 = vpop.permute.xlu0 %609 }
  0xa7   : > { %1189 = vset.pattern.permute.xlu1 %v1220_v1  ;;  %v306_v18 = vpop.permute.xlu1 %305  ;;  %v285_v1 = vmul.f32 %v271_v62, %v1420_v4 }
  0xa8   : > { %v316_v21 = vmul.f32 %v1413_v63, %v306_v18  ;;  %v317_v22 = vmul.f32 %v1417_v3, %v306_v18  ;;  %796 = vperm.xlu1 %1189, %v1330_v37  }
  0xa9   : > { %v1446_v23 = vpop.permute.xlu0 %772 }
  0xaa   : > { %v378_v24 = vadd.f32 %v316_v21, %v289_v19  ;;  %v379_v25 = vadd.f32 %v317_v22, %v290_v20 }
  0xac   : > { %800 = vperm.xlu1 %1189, %v1320_v34   ;;  %v1449_v26 = vpop.permute.xlu1 %324 }
  0xae   : > { %v298_v28 = vpop.permute.xlu0 %297 }
  0xaf   : > { %v312_v29 = vmul.f32 %v1413_v63, %v298_v28  ;;  %v313_v30 = vmul.f32 %v1417_v3, %v298_v28 }
  0xb0   : > { %1191 = vset.pattern.permute.xlu1 %v1223_v38  ;;  %v333_v31 = vpop.permute.xlu1 %332 }
  0xb1   : > { %v1456_v32 = vadd.f32 %v312_v29, %v285_v1  ;;  %v1458_v33 = vadd.f32 %v313_v30, %v286_v27  ;;  %816 = vperm.xlu1 %1191, %v1350_v49   ;;  %v1477_v49 = vld [vmem:[%s1410_s29 + $0x28] sm:$0xff]  ;;  %v343_v57 = vmul.f32 %v1474_v48, %v333_v31 }
  0xb2   : > { %v310_v35 = vpop.permute.xlu0 %309  ;;  %v344_v59 = vmul.f32 %v1477_v49, %v333_v31 }
  0xb3   : > { %v318_v40 = vmul.f32 %v1413_v63, %v310_v35  ;;  %v319_v38 = vmul.f32 %v1417_v3, %v310_v35 }
  0xb4   : > { %v1465_v41 = vpop.permute.xlu1 %336 }
  0xb5   : > { %v1467_v42 = vadd.f32 %v318_v40, %v291_v36  ;;  %v1469_v43 = vadd.f32 %v319_v38, %v292_v39  ;;  %824 = vperm.xlu1 %1191, %v1320_v34  }
  0xb6   : > { %v467_v45 = vpop.permute.xlu0 %466 }
  0xb7   : > { %v481_v7 = vmul.f32 %v1413_v63, %v467_v45  ;;  %v482_v8 = vmul.f32 %v1417_v3, %v467_v45 }
  0xb9   : > { %828 = vperm.xlu1 %1191, %v1361_v54   ;;  %v356_v46 = vpop.permute.xlu1 %355 }
  0xba   : > { %v479_v47 = vpop.permute.xlu0 %478  ;;  %v369_v29 = vmul.f32 %v1483_v51, %v356_v46 }
  0xbb   : > { %v488_v22 = vmul.f32 %v1417_v3, %v479_v47 }
  0xbd   : > { %1193 = vset.pattern.permute.xlu1 %v1224_v44  ;;  %v360_v55 = vpop.permute.xlu1 %359 }
  0xbe   : > { %v370_v60 = vmul.f32 %v1480_v50, %v360_v55  ;;  %v371_v54 = vmul.f32 %v1483_v51, %v360_v55  ;;  %844 = vperm.xlu1 %1193, %v1330_v37   ;;  %v1491_v61 = vpop.permute.xlu0 %629 }
  0xc0   : > { %v386_v62 = vadd.f32 %v370_v60, %v343_v57  ;;  %v387_v6 = vadd.f32 %v371_v54, %v344_v59 }
  0xc2   : > { %v1495_v44 = vadd.f32 %v386_v62, %v378_v24  ;;  %v1497_v9 = vadd.f32 %v387_v6, %v379_v25  ;;  %848 = vperm.xlu1 %1193, %v1320_v34   ;;  %v443_v10 = vpop.permute.xlu1 %442  ;;  %v1500_v12 = vpop.permute.xlu0 %641  ;;  %v487_v34 = vmul.f32 %v1413_v63, %v479_v47 }
  0xc3   : > { %v457_v16 = vmul.f32 %v443_v10, %v1420_v4  ;;  %v458_v37 = vmul.f32 %v443_v10, %v1423_v5 }
  0xc4   : > { %1886 = vst [vmem:[#allocation2_spill] sm:$0xff] %v1495_v44  ;;  %1887 = vst [vmem:[#allocation3_spill] sm:$0xff] %v1497_v9 }
  0xc5   : > { %v1504_v18 = vadd.f32 %v481_v7, %v457_v16  ;;  %v1506_v19 = vadd.f32 %v482_v8, %v458_v37  ;;  %v211_v37 = vand.u32 127, %v210_v0  ;;  %v346_v0 = vmul.f32 %v1477_v49, %v1465_v41 }
  0xc6   : > { %1194 = vset.pattern.permute.xlu1 %v1221_v2  ;;  %v451_v20 = vpop.permute.xlu1 %450  ;;  %v1509_v21 = vpop.permute.xlu0 %792 }
  0xc7   : > { %940 = vperm.xlu1 %1194, %v926_v53   ;;  %v368_v53 = vmul.f32 %v1480_v50, %v356_v46  ;;  %v461_v47 = vmul.f32 %v451_v20, %v1420_v4  ;;  %v462_v46 = vmul.f32 %v451_v20, %v1423_v5 }
  0xca   : > { %v455_v24 = vpop.permute.xlu1 %454  ;;  %v1516_v25 = vpop.permute.xlu0 %804 }
  0xcb   : > { %v463_v1 = vmul.f32 %v455_v24, %v1420_v4  ;;  %v464_v27 = vmul.f32 %v455_v24, %v1423_v5  ;;  %948 = vperm.xlu1 %1194, %v1366_v56  }
  0xcd   : > { %v1521_v2 = vadd.f32 %v487_v34, %v463_v1  ;;  %v1523_v28 = vadd.f32 %v488_v22, %v464_v27  ;;  %v340_v34 = vmul.f32 %v1477_v49, %v1449_v26  ;;  %v216_v1 = vand.u32 1, %v211_v37 }
  0xcf   : > { %v329_v30 = vpop.permute.xlu0 %328  ;;  %952 = vperm.xlu1 %1194, %v1372_v58   ;;  %v471_v31 = vpop.permute.xlu1 %470  ;;  %vm1571_vm0 = vcmp.eq.s32.totalorder %v216_v1, 0 }
  0xd0   : > { %v341_v56 = vmul.f32 %v1474_v48, %v329_v30  ;;  %v342_v35 = vmul.f32 %v1477_v49, %v329_v30  ;;  %v483_v36 = vmul.f32 %v1413_v63, %v471_v31  ;;  %v484_v39 = vmul.f32 %v1417_v3, %v471_v31 }
  0xd2   : > { %v384_v40 = vadd.f32 %v368_v53, %v341_v56  ;;  %v385_v38 = vadd.f32 %v369_v29, %v342_v35  ;;  %v539_v45 = vadd.f32 %v483_v36, %v459_v11  ;;  %v540_v15 = vadd.f32 %v484_v39, %v460_v52 }
  0xd3   : > { %v475_v55 = vpop.permute.xlu1 %474  ;;  %v495_v57 = vpop.permute.xlu0 %494  ;;  %v345_v52 = vmul.f32 %v1474_v48, %v1465_v41 }
  0xd4   : > { %v1539_v58 = vadd.f32 %v384_v40, %v1431_v13  ;;  %v1542_v59 = vadd.f32 %v385_v38, %v1433_v14  ;;  %v485_v60 = vmul.f32 %v1413_v63, %v475_v55  ;;  %v486_v54 = vmul.f32 %v1417_v3, %v475_v55 }
  0xd5   : > { %v339_v14 = vmul.f32 %v1474_v48, %v1449_v26  ;;  %v507_v53 = vmul.f32 %v1474_v48, %v495_v57  ;;  %v508_v29 = vmul.f32 %v1477_v49, %v495_v57 }
  0xd6   : > { %1888 = vst [vmem:[#allocation4_spill] sm:$0xff] %v1539_v58  ;;  %1889 = vst [vmem:[#allocation5_spill] sm:$0xff] %v1542_v59  ;;  %v541_v62 = vadd.f32 %v485_v60, %v461_v47  ;;  %v542_v6 = vadd.f32 %v486_v54, %v462_v46 }
  0xd7   : > { %v1546_v7 = vpop.permute.xlu0 %657 }
  0xd8   : > { %v491_v8 = vpop.permute.xlu1 %490 }
  0xd9   : > { %v505_v38 = vmul.f32 %v1474_v48, %v491_v8 }
  0xdb   : > { %v1548_v10 = vpop.permute.xlu0 %820 }
  0xdc   : > { %v499_v16 = vpop.permute.xlu1 %498 }
  0xdd   : > { %v509_v46 = vmul.f32 %v1474_v48, %v499_v16  ;;  %v510_v55 = vmul.f32 %v1477_v49, %v499_v16 }
  0xe0   : > { %v352_v20 = vpop.permute.xlu0 %351  ;;  %v503_v13 = vpop.permute.xlu1 %502 }
  0xe1   : > { %v366_v22 = vmul.f32 %v1480_v50, %v352_v20  ;;  %v367_v24 = vmul.f32 %v1483_v51, %v352_v20 }
  0xe3   : > { %v382_v27 = vadd.f32 %v366_v22, %v339_v14  ;;  %v383_v11 = vadd.f32 %v367_v24, %v340_v34 }
  0xe4   : > { %v364_v30 = vpop.permute.xlu0 %363 }
  0xe5   : > { %v1564_v26 = vadd.f32 %v382_v27, %v1456_v32  ;;  %v1567_v31 = vadd.f32 %v383_v11, %v1458_v33  ;;  %v372_v56 = vmul.f32 %v1480_v50, %v364_v30  ;;  %v373_v35 = vmul.f32 %v1483_v51, %v364_v30  ;;  %v519_v36 = vpop.permute.xlu1 %518 }
  0xe6   : > { %v531_v41 = vmul.f32 %v1480_v50, %v519_v36  ;;  %v532_v40 = vmul.f32 %v1483_v51, %v519_v36  ;;  %v506_v32 = vmul.f32 %v1477_v49, %v491_v8  ;;  %v511_v27 = vmul.f32 %v1474_v48, %v503_v13 }
  0xe7   : > { %v388_v47 = vadd.f32 %v372_v56, %v345_v52  ;;  %v389_v33 = vadd.f32 %v373_v35, %v346_v0 }
  0xe8   : > { %v547_v57 = vadd.f32 %v531_v41, %v507_v53  ;;  %v548_v60 = vadd.f32 %v532_v40, %v508_v29  ;;  %v515_v54 = vpop.permute.xlu0 %514 }
  0xe9   : > { %v1582_v37 = vadd.f32 %v388_v47, %v1467_v42  ;;  %v1585_v20 = vadd.f32 %v389_v33, %v1469_v43  ;;  %v529_v14 = vmul.f32 %v1480_v50, %v515_v54  ;;  %v530_v34 = vmul.f32 %v1483_v51, %v515_v54  ;;  %v523_v8 = vpop.permute.xlu1 %522 }
  0xea   : > { %v1589_v22 = vadd.f32 %v547_v57, %v539_v45  ;;  %v1591_v24 = vadd.f32 %v548_v60, %v540_v15  ;;  %v533_v16 = vmul.f32 %v1480_v50, %v523_v8  ;;  %v534_v1 = vmul.f32 %v1483_v51, %v523_v8 }
  0xeb   : > { %1892 = vst [vmem:[#allocation6_spill] sm:$0xff] %v1582_v37  ;;  %1893 = vst [vmem:[#allocation7_spill] sm:$0xff] %v1585_v20  ;;  %v512_v42 = vmul.f32 %v1477_v49, %v503_v13  ;;  %v545_v11 = vadd.f32 %v529_v14, %v505_v38  ;;  %v546_v43 = vadd.f32 %v530_v34, %v506_v32 }
  0xec   : > { %1894 = vst [vmem:[#allocation8_spill] sm:$0xff] %v1589_v22  ;;  %1895 = vst [vmem:[#allocation9_spill] sm:$0xff] %v1591_v24  ;;  %v549_v52 = vadd.f32 %v533_v16, %v509_v46  ;;  %v550_v0 = vadd.f32 %v534_v1, %v510_v55  ;;  %v527_v53 = vpop.permute.xlu0 %526  ;;  %v650_v57 = vmul.f32 %v1413_v63, %v1500_v12 }
  0xed   : > { %v1606_v29 = vadd.f32 %v545_v11, %v1504_v18  ;;  %v1609_v13 = vadd.f32 %v546_v43, %v1506_v19  ;;  %v535_v30 = vmul.f32 %v1480_v50, %v527_v53  ;;  %v536_v56 = vmul.f32 %v1483_v51, %v527_v53 }
  0xee   : > { %v1613_v35 = vadd.f32 %v549_v52, %v541_v62  ;;  %v1615_v36 = vadd.f32 %v550_v0, %v542_v6  ;;  %v606_v41 = vpop.permute.xlu1 %605  ;;  %v622_v16 = vmul.f32 %v1438_v17, %v1420_v4  ;;  %v623_v1 = vmul.f32 %v1438_v17, %v1423_v5 }
  0xef   : > { %v551_v40 = vadd.f32 %v535_v30, %v511_v27  ;;  %v552_v38 = vadd.f32 %v536_v56, %v512_v42  ;;  %v644_v55 = vmul.f32 %v1413_v63, %v1491_v61  ;;  %v645_v46 = vmul.f32 %v1417_v3, %v1491_v61 }
  0xf0   : > { %1896 = vst [vmem:[#allocation10_spill] sm:$0xff] %v1613_v35  ;;  %1897 = vst [vmem:[#allocation11_spill] sm:$0xff] %v1615_v36  ;;  %v620_v15 = vmul.f32 %v606_v41, %v1420_v4  ;;  %v621_v45 = vmul.f32 %v606_v41, %v1423_v5  ;;  %v786_v62 = vmul.f32 %v1446_v23, %v1423_v5 }
  0xf1   : > { %v1634_v32 = vadd.f32 %v551_v40, %v1521_v2  ;;  %v1637_v47 = vadd.f32 %v552_v38, %v1523_v28  ;;  %v651_v2 = vmul.f32 %v1417_v3, %v1500_v12  ;;  %v808_v19 = vmul.f32 %v1417_v3, %v1509_v21 }
  0xf2   : > { %v614_v33 = vpop.permute.xlu1 %613  ;;  %v1703_v61 = vmul.f32 %v1413_v63, %v1516_v25  ;;  %v670_v41 = vmul.f32 %v1474_v48, %v1546_v7  ;;  %v671_v18 = vmul.f32 %v1477_v49, %v1546_v7  ;;  %v700_v37 = vadd.f32 %v644_v55, %v620_v15 }
  0xf3   : > { %1898 = vst [vmem:[#allocation12_spill] sm:$0xff] %v1634_v32  ;;  %1899 = vst [vmem:[#allocation13_spill] sm:$0xff] %v1637_v47  ;;  %v624_v52 = vmul.f32 %v614_v33, %v1420_v4  ;;  %v625_v0 = vmul.f32 %v614_v33, %v1423_v5  ;;  %v833_v47 = vmul.f32 %v1474_v48, %v1548_v10 }
  0xf4   : > { %1904 = vst [vmem:[#allocation18_spill] sm:$0xff] %v1703_v61 }
  0xf6   : > { %v618_v60 = vpop.permute.xlu1 %617 }
  0xf7   : > { %v626_v28 = vmul.f32 %v618_v60, %v1420_v4  ;;  %v627_v54 = vmul.f32 %v618_v60, %v1423_v5 }
  0xf9   : > { %v1653_v14 = vadd.f32 %v650_v57, %v626_v28  ;;  %v1655_v34 = vadd.f32 %v651_v2, %v627_v54 }
  0xfb   : > { %1900 = vst [vmem:[#allocation14_spill] sm:$0xff] %v1653_v14  ;;  %1901 = vst [vmem:[#allocation15_spill] sm:$0xff] %v1655_v34  ;;  %v634_v8 = vpop.permute.xlu1 %633 }
  0xfc   : > { %v646_v27 = vmul.f32 %v1413_v63, %v634_v8  ;;  %v647_v12 = vmul.f32 %v1417_v3, %v634_v8 }
  0xfe   : > { %v1663_v42 = vadd.f32 %v646_v27, %v622_v16  ;;  %v1665_v11 = vadd.f32 %v647_v12, %v623_v1  ;;  %v678_v16 = vpop.permute.xlu0 %677 }
  0xff   : > { %v638_v43 = vpop.permute.xlu1 %637 }
 0x100   : > { %v648_v53 = vmul.f32 %v1413_v63, %v638_v43  ;;  %v649_v30 = vmul.f32 %v1417_v3, %v638_v43  ;;  %v692_v43 = vmul.f32 %v1480_v50, %v678_v16 }
 0x102   : > { %v1671_v56 = vadd.f32 %v648_v53, %v624_v52  ;;  %v1673_v17 = vadd.f32 %v649_v30, %v625_v0  ;;  %v690_v27 = vpop.permute.xlu0 %689  ;;  %v693_v52 = vmul.f32 %v1483_v51, %v678_v16  ;;  %v785_v16 = vmul.f32 %v1446_v23, %v1420_v4 }
 0x103   : > { %v834_v23 = vmul.f32 %v1477_v49, %v1548_v10  ;;  %v1714_v24 = vmul.f32 %v1480_v50, %v690_v27  ;;  %v1717_v59 = vmul.f32 %v1483_v51, %v690_v27 }
 0x104   : > { %1902 = vst [vmem:[#allocation16_spill] sm:$0xff] %v1671_v56  ;;  %1903 = vst [vmem:[#allocation17_spill] sm:$0xff] %v1673_v17  ;;  %v654_v40 = vpop.permute.xlu1 %653 }
 0x105   : > { %v668_v53 = vmul.f32 %v1474_v48, %v654_v40  ;;  %v669_v30 = vmul.f32 %v1477_v49, %v654_v40  ;;  %v807_v40 = vmul.f32 %v1413_v63, %v1509_v21  ;;  %v701_v21 = vadd.f32 %v645_v46, %v621_v45 }
 0x106   : > { %v841_v0 = vpop.permute.xlu0 %840 }
 0x107   : > { %v708_v20 = vadd.f32 %v692_v43, %v668_v53  ;;  %v709_v32 = vadd.f32 %v693_v52, %v669_v30  ;;  %v855_v43 = vmul.f32 %v1480_v50, %v841_v0  ;;  %v856_v45 = vmul.f32 %v1483_v51, %v841_v0 }
 0x108   : > { %v662_v38 = vpop.permute.xlu1 %661 }
 0x109   : > { %v716_v55 = vadd.f32 %v708_v20, %v700_v37  ;;  %v717_v27 = vadd.f32 %v709_v32, %v701_v21  ;;  %v672_v53 = vmul.f32 %v1474_v48, %v662_v38 }
 0x10a   : > { %v853_v58 = vpop.permute.xlu0 %852 }
 0x10b   : > { %v1726_v15 = vmul.f32 %v1480_v50, %v853_v58  ;;  %v1729_v46 = vmul.f32 %v1483_v51, %v853_v58 }
 0x10c   : > { %v666_v57 = vpop.permute.xlu1 %665 }
 0x10d   : > { %1905 = vst [vmem:[#allocation19_spill] sm:$0xff] %v1729_v46  ;;  %v674_v37 = vmul.f32 %v1474_v48, %v666_v57  ;;  %v675_v20 = vmul.f32 %v1477_v49, %v666_v57 }
 0x111   : > { %v682_v2 = vpop.permute.xlu1 %681 }
 0x112   : > { %v694_v7 = vmul.f32 %v1480_v50, %v682_v2  ;;  %v695_v34 = vmul.f32 %v1483_v51, %v682_v2 }
 0x114   : > { %v710_v61 = vadd.f32 %v694_v7, %v670_v41  ;;  %v711_v17 = vadd.f32 %v695_v34, %v671_v18 }
 0x115   : > { %v686_v60 = vpop.permute.xlu1 %685 }
 0x116   : > { %v696_v21 = vmul.f32 %v1480_v50, %v686_v60  ;;  %v718_v34 = vadd.f32 %v710_v61, %v1663_v42  ;;  %v719_v7 = vadd.f32 %v711_v17, %v1665_v11 }
 0x11a   : > { %v769_v28 = vpop.permute.xlu1 %768 }
 0x11b   : > { %v783_v52 = vmul.f32 %v769_v28, %v1420_v4  ;;  %v784_v2 = vmul.f32 %v769_v28, %v1423_v5 }
 0x11d   : > { %v863_v9 = vadd.f32 %v807_v40, %v783_v52  ;;  %v864_v35 = vadd.f32 %v808_v19, %v784_v2 }
 0x11e   : > { %v1675_v54 = vpop.permute.xlu1 %776 }
 0x122   : > { %v1677_v8 = vpop.permute.xlu1 %780 }
 0x127   : > { %v797_v33 = vpop.permute.xlu1 %796 }
 0x128   : > { %v809_v30 = vmul.f32 %v1413_v63, %v797_v33  ;;  %v810_v0 = vmul.f32 %v1417_v3, %v797_v33 }
 0x12a   : > { %v865_v33 = vadd.f32 %v809_v30, %v785_v16  ;;  %v866_v41 = vadd.f32 %v810_v0, %v786_v62 }
 0x12b   : > { %v1679_v1 = vpop.permute.xlu1 %800 }
 0x12c   : > { %v811_v19 = vmul.f32 %v1413_v63, %v1679_v1  ;;  %v812_v62 = vmul.f32 %v1417_v3, %v1679_v1  ;;  %v788_v63 = vmul.f32 %v1675_v54, %v1423_v5  ;;  %v1906_v1 = vsel %vm1571_vm0, %v1564_v26, %v1606_v29 }
 0x12d   : > { %v814_v26 = vmul.f32 %v1417_v3, %v1516_v25  ;;  %v714_v29 = vadd.f32 %v1714_v24, %v674_v37  ;;  %v1909_v3 = vld [vmem:[#allocation2_spill] sm:$0xff] }
 0x12e   : > { %v1910_v25 = vld [vmem:[#allocation10_spill] sm:$0xff] }
 0x12f   : > { %v1911_v24 = vsel %vm1571_vm0, %v1909_v3, %v1910_v25 }
 0x130   : > { %v817_v12 = vpop.permute.xlu1 %816 }
 0x131   : > { %v831_v14 = vmul.f32 %v1474_v48, %v817_v12  ;;  %v832_v10 = vmul.f32 %v1477_v49, %v817_v12  ;;  %v673_v12 = vmul.f32 %v1477_v49, %v662_v38  ;;  %v697_v38 = vmul.f32 %v1483_v51, %v686_v60 }
 0x132   : > { %v712_v60 = vadd.f32 %v696_v21, %v672_v53 }
 0x133   : > { %v871_v56 = vadd.f32 %v855_v43, %v831_v14  ;;  %v872_v36 = vadd.f32 %v856_v45, %v832_v10  ;;  %v713_v40 = vadd.f32 %v697_v38, %v673_v12  ;;  %v1913_v12 = vld [vmem:[#allocation11_spill] sm:$0xff]  ;;  %v1917_v38 = vld [vmem:[#allocation18_spill] sm:$0xff] }
 0x134   : > { %v1691_v6 = vpop.permute.xlu1 %824 }
 0x135   : > { %v879_v10 = vadd.f32 %v871_v56, %v863_v9  ;;  %v880_v57 = vadd.f32 %v872_v36, %v864_v35  ;;  %v836_v9 = vmul.f32 %v1477_v49, %v1691_v6 }
 0x137   : > { %v964_v36 = vsel %vm1571_vm0, %v717_v27, %v880_v57  ;;  %v963_v42 = vsel %vm1571_vm0, %v716_v55, %v879_v10  ;;  %v715_v27 = vadd.f32 %v1717_v59, %v675_v20  ;;  %v1912_v59 = vld [vmem:[#allocation3_spill] sm:$0xff] }
 0x138   : > { %v829_v22 = vpop.permute.xlu1 %828  ;;  %v1914_v30 = vsel %vm1571_vm0, %v1912_v59, %v1913_v12 }
 0x139   : > { %v838_v11 = vmul.f32 %v1477_v49, %v829_v22  ;;  %v790_v49 = vmul.f32 %v1677_v8, %v1423_v5 }
 0x13d   : > { %v845_v58 = vpop.permute.xlu1 %844 }
 0x13e   : > { %v857_v32 = vmul.f32 %v1480_v50, %v845_v58  ;;  %v858_v28 = vmul.f32 %v1483_v51, %v845_v58 }
 0x140   : > { %v873_v18 = vadd.f32 %v857_v32, %v833_v47  ;;  %v874_v14 = vadd.f32 %v858_v28, %v834_v23  ;;  %v835_v47 = vmul.f32 %v1474_v48, %v1691_v6  ;;  %v837_v6 = vmul.f32 %v1474_v48, %v829_v22  ;;  %v1916_v28 = vld [vmem:[#allocation17_spill] sm:$0xff] }
 0x141   : > { %v849_v43 = vpop.permute.xlu1 %848  ;;  %v789_v48 = vmul.f32 %v1677_v8, %v1420_v4  ;;  %v721_v21 = vadd.f32 %v713_v40, %v1916_v28 }
 0x142   : > { %v881_v45 = vadd.f32 %v873_v18, %v865_v33  ;;  %v882_v44 = vadd.f32 %v874_v14, %v866_v41  ;;  %v859_v58 = vmul.f32 %v1480_v50, %v849_v43  ;;  %v860_v46 = vmul.f32 %v1483_v51, %v849_v43  ;;  %v1918_v43 = vld [vmem:[#allocation14_spill] sm:$0xff] }
 0x143   : > { %v787_v51 = vmul.f32 %v1675_v54, %v1420_v4  ;;  %v1907_v54 = vsel %vm1571_vm0, %v1567_v31, %v1609_v13  ;;  %v945_v31 = vpop.permute.xlu0 %944  ;;  %v877_v4 = vadd.f32 %v1726_v15, %v837_v6  ;;  %v1908_v13 = vld [vmem:[#allocation19_spill] sm:$0xff]  ;;  %v1915_v15 = vld [vmem:[#allocation16_spill] sm:$0xff]  ;;  %v869_v33 = vadd.f32 %v1917_v38, %v789_v48 }
 0x144   : > { %v966_v35 = vsel %vm1571_vm0, %v719_v7, %v882_v44  ;;  %v965_v50 = vsel %vm1571_vm0, %v718_v34, %v881_v45  ;;  %v875_v44 = vadd.f32 %v859_v58, %v835_v47  ;;  %v876_v56 = vadd.f32 %v860_v46, %v836_v9  ;;  %v1919_v58 = vld [vmem:[#allocation15_spill] sm:$0xff] }
 0x145   : > { %v867_v22 = vadd.f32 %v811_v19, %v787_v51  ;;  %v868_v46 = vadd.f32 %v812_v62, %v788_v63  ;;  %v878_v52 = vadd.f32 %v1908_v13, %v838_v11  ;;  %v974_v37 = vadd.f32 %v966_v35, %v945_v31 }
 0x146   : > { %v941_v17 = vpop.permute.xlu1 %940  ;;  %v973_v20 = vadd.f32 %v965_v50, %v945_v31  ;;  %v720_v32 = vadd.f32 %v712_v60, %v1915_v15  ;;  %v870_v41 = vadd.f32 %v814_v26, %v790_v49  ;;  %v885_v18 = vadd.f32 %v877_v4, %v869_v33  ;;  %v1927_v26 = vld [vmem:[#allocation12_spill] sm:$0xff]  ;;  %v1930_v4 = vld [vmem:[#allocation13_spill] sm:$0xff] }
 0x147   : > { %v955_v16 = vadd.f32 %v941_v17, %v1906_v1  ;;  %v956_v61 = vadd.f32 %v941_v17, %v1907_v54  ;;  %v972_v23 = vadd.f32 %v964_v36, %v941_v17  ;;  %v971_v55 = vadd.f32 %v963_v42, %v941_v17  ;;  %v1920_v36 = vld [vmem:[#allocation4_spill] sm:$0xff] }
 0x148   : > { %v883_v5 = vadd.f32 %v875_v44, %v867_v22  ;;  %v884_v8 = vadd.f32 %v876_v56, %v868_v46  ;;  %v886_v14 = vadd.f32 %v878_v52, %v870_v41  ;;  %v722_v45 = vadd.f32 %v714_v29, %v1918_v43  ;;  %v1921_v42 = vld [vmem:[#allocation8_spill] sm:$0xff]  ;;  %v1923_v44 = vld [vmem:[#allocation5_spill] sm:$0xff]  ;;  %v1926_v46 = vld [vmem:[#allocation6_spill] sm:$0xff] }
 0x149   : > { %989 = vrot.lane.b32.xlu1 %v972_v23, %s1225_s30  ;;  %987 = vrot.lane.b32.xlu0 %v971_v55, %s1225_s30  ;;  %v723_v60 = vadd.f32 %v715_v27, %v1919_v58  ;;  %v1922_v6 = vsel %vm1571_vm0, %v1920_v36, %v1921_v42  ;;  %v1924_v56 = vld [vmem:[#allocation9_spill] sm:$0xff]  ;;  %v1928_v29 = vsel %vm1571_vm0, %v1926_v46, %v1927_v26 }
 0x14a   : > { %v949_v2 = vpop.permute.xlu1 %948  ;;  %v968_v34 = vsel %vm1571_vm0, %v721_v21, %v884_v8  ;;  %v967_v7 = vsel %vm1571_vm0, %v720_v32, %v883_v5  ;;  %v969_v62 = vsel %vm1571_vm0, %v722_v45, %v885_v18  ;;  %v957_v11 = vadd.f32 %v945_v31, %v1922_v6 }
 0x14b   : > { %v959_v53 = vadd.f32 %v949_v2, %v1911_v24  ;;  %v960_v0 = vadd.f32 %v949_v2, %v1914_v30  ;;  %v976_v10 = vadd.f32 %v968_v34, %v949_v2  ;;  %v975_v57 = vadd.f32 %v967_v7, %v949_v2 }
 0x14c   : > { %v970_v19 = vsel %vm1571_vm0, %v723_v60, %v886_v14  ;;  %v1925_v17 = vsel %vm1571_vm0, %v1923_v44, %v1924_v56 }
 0x14d   : > { %993 = vrot.lane.b32.xlu1 %v974_v37, %s1225_s30  ;;  %991 = vrot.lane.b32.xlu0 %v973_v20, %s1225_s30  ;;  %v958_v1 = vadd.f32 %v945_v31, %v1925_v17  ;;  %v1929_v31 = vld [vmem:[#allocation7_spill] sm:$0xff] }
 0x14e   : > { %v953_v40 = vpop.permute.xlu1 %952  ;;  %v1931_v13 = vsel %vm1571_vm0, %v1929_v31, %v1930_v4 }
 0x14f   : > { %v978_v47 = vadd.f32 %v970_v19, %v953_v40  ;;  %v977_v9 = vadd.f32 %v969_v62, %v953_v40  ;;  %v961_v27 = vadd.f32 %v953_v40, %v1928_v29  ;;  %v962_v52 = vadd.f32 %v953_v40, %v1931_v13 }
 0x151   : > { %997 = vrot.lane.b32.xlu1 %v976_v10, %s1225_s30  ;;  %995 = vrot.lane.b32.xlu0 %v975_v57, %s1225_s30 }
 0x155   : > { %1001 = vrot.lane.b32.xlu1 %v978_v47, %s1225_s30  ;;  %999 = vrot.lane.b32.xlu0 %v977_v9, %s1225_s30 }
 0x1bb   : > { %v990_v35 = vpop.permute.xlu1 %989  ;;  %v988_v50 = vpop.permute.xlu0 %987 }
 0x1bc   : > { %v1013_v51 = vsel %vm1011_vm1, %v956_v61, %v990_v35  ;;  %v1012_v63 = vsel %vm1011_vm1, %v955_v16, %v988_v50 }
 0x1bd   : > { %1022 = vst.msk [vmem:[%s208_s6 + $0x8] sm:$0xff] %vm1020_vm2, %v1013_v51  ;;  %1021 = vst.msk [vmem:[%s208_s6] sm:$0xff] %vm1020_vm2, %v1012_v63 }
 0x1bf   : > { %v994_v54 = vpop.permute.xlu1 %993  ;;  %v992_v61 = vpop.permute.xlu0 %991 }
 0x1c0   : > { %v1015_v16 = vsel %vm1011_vm1, %v958_v1, %v994_v54  ;;  %v1014_v23 = vsel %vm1011_vm1, %v957_v11, %v992_v61 }
 0x1c1   : > { %1024 = vst.msk [vmem:[%s208_s6 + $0x18] sm:$0xff] %vm1020_vm2, %v1015_v16  ;;  %1023 = vst.msk [vmem:[%s208_s6 + $0x10] sm:$0xff] %vm1020_vm2, %v1014_v23 }
 0x1c3   : > { %v998_v55 = vpop.permute.xlu1 %997  ;;  %v996_v48 = vpop.permute.xlu0 %995 }
 0x1c4   : > { %v1017_v49 = vsel %vm1011_vm1, %v960_v0, %v998_v55  ;;  %v1016_v22 = vsel %vm1011_vm1, %v959_v53, %v996_v48 }
 0x1c5   : > { %1026 = vst.msk [vmem:[%s208_s6 + $0x28] sm:$0xff] %vm1020_vm2, %v1017_v49  ;;  %1025 = vst.msk [vmem:[%s208_s6 + $0x20] sm:$0xff] %vm1020_vm2, %v1016_v22 }
 0x1c7   : > { %v1002_v5 = vpop.permute.xlu1 %1001  ;;  %v1000_v8 = vpop.permute.xlu0 %999 }
 0x1c8   : > { %v1019_v2 = vsel %vm1011_vm1, %v962_v52, %v1002_v5  ;;  %v1018_v3 = vsel %vm1011_vm1, %v961_v27, %v1000_v8 }
 0x1c9   : > { %1028 = vst.msk [vmem:[%s208_s6 + $0x38] sm:$0xff] %vm1020_vm2, %v1019_v2  ;;  %1027 = vst.msk [vmem:[%s208_s6 + $0x30] sm:$0xff] %vm1020_vm2, %v1018_v3 }
 0x1ca PF: > { %s13_s14 = sadd.s32 1, %s1218_s14   ;;  %s1932_s12 = smov %s1214_s13 }
 0x1cb   : > { %p10_p5 = scmp.ge.s32.totalorder %s13_s14, 4   ;;  %s1933_s13 = smov %s1935_s15 }
 0x1cd   :  { %12 = sbr.rel (!%p10_p5) target bundleno = 2 (0x2), region = 68 }

</bundles_post_ra>
